<compile_context>
chip_gen: v7x
topology: tpu7x:2x2x1
jax: 0.10.0
libtpu: 0.0.40
codegen_flags: <defaults>
</compile_context>

<pallas_src>
import functools

import jax
import jax.numpy as jnp
from jax.experimental import pallas as pl
from jax.experimental.pallas import tpu as pltpu


# ----------------------------------------------------------------------------
# Reference table construction (mirrors the PyTorch reset_parameters exactly).
# Only used by the pure-JAX reference check below.
# ----------------------------------------------------------------------------
def reset_parameters(num_embeddings: int, embedding_dim: int, padding_idx: int):
    half = embedding_dim // 2
    inv = jnp.log(jnp.float32(10000.0)) / (half - 1)
    freq = jnp.exp(jnp.arange(half, dtype=jnp.float32) * -inv)
    ang = jnp.arange(num_embeddings + 1, dtype=jnp.float32)[:, None] * freq[None, :]
    table = jnp.concatenate([jnp.sin(ang), jnp.cos(ang)], axis=1)
    return table.at[padding_idx].set(0.0)  # (num_embeddings + 1, embedding_dim)


# ----------------------------------------------------------------------------
# Pallas kernel: one (batch row, column tile) per grid step.
#   ids_ref : (1, S)        int32   lane-major token ids
#   freq_ref: (1, half_tile) float32 inverse-frequency tile
#   out_ref : (S, half_tile) or (S, D)  output tile
# ----------------------------------------------------------------------------
def _pos_emb_kernel(ids_ref, freq_ref, out_ref, *, padding_idx: int,
                    split_sincos: bool):
    seq_len = ids_ref.shape[1]

    ids = ids_ref[...]                                     # (1, S) int32, lane-major
    mask_row = (ids != padding_idx).astype(jnp.float32)    # (1, S)

    # Inclusive masked cumsum along the (lane-major) sequence axis.
    # Hillis-Steele scan, log2(S) static shifts; lane-major keeps every stage
    # at ~S/128 vregs of VPU/XLU work.
    x = mask_row
    lane = jax.lax.broadcasted_iota(jnp.int32, (1, seq_len), 1)
    shift = 1
    while shift < seq_len:                                 # unrolled at trace time
        if seq_len % 128 == 0:
            # XLU lane rotate; wrapped lanes masked off.
            prev = pltpu.roll(x, shift, axis=1)            # prev[s] = x[s - shift]
            prev = jnp.where(lane >= shift, prev, 0.0)
        else:
            # Small / unaligned S: zero-padded shift via slice + concat.
            prev = jnp.concatenate(
                [jnp.zeros((1, shift), jnp.float32), x[:, : seq_len - shift]],
                axis=1)
        x = x + prev
        shift *= 2

    # positions = cumsum(mask) * mask + padding_idx  (exact in f32 for S < 2**24)
    pos_row = x * mask_row + jnp.float32(padding_idx)      # (1, S)

    # One small (1,S)->(S,1) transpose; everything downstream is row-per-position.
    pos_col = jnp.transpose(pos_row)                       # (S, 1)
    # Non-pad rows have positions > padding_idx (exact integer-valued f32 compare).
    maskf = (pos_col > jnp.float32(padding_idx)).astype(jnp.float32)   # (S, 1)

    # Angle tile.  Kept as an exact f32 VPU broadcast-multiply (not an MXU
    # outer product) so results match the f32 reference table to 1e-5.
    ang = pos_col * freq_ref[...]                          # (S, half_tile)

    if split_sincos:
        # Grid axis 1 selects which half of the embedding this step produces.
        sincos = pl.program_id(1)

        @pl.when(sincos == 0)
        def _():
            out_ref[...] = (jnp.sin(ang) * maskf).astype(out_ref.dtype)

        @pl.when(sincos == 1)
        def _():
            out_ref[...] = (jnp.cos(ang) * maskf).astype(out_ref.dtype)
    else:
        # Single lane-dense store of the full [sin | cos] row tile.
        out_ref[...] = jnp.concatenate(
            [jnp.sin(ang) * maskf, jnp.cos(ang) * maskf], axis=-1
        ).astype(out_ref.dtype)


# ----------------------------------------------------------------------------
# Wrapper
# ----------------------------------------------------------------------------
def sinusoidal_positional_embedding(input_ids, embedding_dim: int,
                                    padding_idx: int,
                                    out_dtype=jnp.float32):
    """input_ids: (bz, sz) int token ids -> (bz, sz, embedding_dim) out_dtype.

    Pass out_dtype=jnp.bfloat16 to halve the HBM writeback (intermediate math
    stays f32); default f32 keeps exact parity with the PyTorch module.
    """
    bz, sz = input_ids.shape
    half = embedding_dim // 2
    assert embedding_dim == 2 * half and half >= 2, "embedding_dim must be even (>=4)"

    # Inverse-frequency vector, same formula as reset_parameters.
    inv = jnp.log(jnp.float32(10000.0)) / (half - 1)
    freq = jnp.exp(jnp.arange(half, dtype=jnp.float32) * -inv).reshape(1, half)

    # Lane-major ids: a single dense (1, sz) row per batch element.
    ids3 = input_ids.astype(jnp.int32).reshape(bz, 1, sz)

    # ---- choose column tiling over the half (frequency) axis -----------------
    split_sincos = (half % 128 == 0)
    if split_sincos:
        td = half
        # Shrink the column tile (keeping it a 128-multiple divisor of half)
        # until the f32 output block is <= ~4 MiB, so double-buffered blocks
        # stay far below v7x's 64 MiB VMEM.
        while sz * td * 4 > (4 << 20) and td % 256 == 0:
            td //= 2
        n_d = half // td
    else:
        td, n_d = half, 1

    # ---- derive the VMEM limit from the actual block footprint ---------------
    out_itemsize = jnp.dtype(out_dtype).itemsize
    blk_cols = td if split_sincos else embedding_dim
    out_block_bytes = sz * blk_cols * out_itemsize
    ids_block_bytes = sz * 4
    freq_block_bytes = td * 4
    vmem_limit = 2 * (out_block_bytes + ids_block_bytes + freq_block_bytes)  # 2x pipeline bufs
    vmem_limit += 4 * sz * td * 4                       # f32 temporaries (ang / sin / cos)
    vmem_limit = int(min(max(vmem_limit + (4 << 20), 16 << 20), 64 << 20))

    kernel = functools.partial(_pos_emb_kernel, padding_idx=int(padding_idx),
                               split_sincos=split_sincos)

    if split_sincos:
        grid = (bz, 2, n_d)                             # (row, sin/cos, column tile)
        in_specs = [
            pl.BlockSpec((None, 1, sz), lambda b, s, d: (b, 0, 0)),   # ids stay resident per row
            pl.BlockSpec((1, td), lambda b, s, d: (0, d)),            # tiny freq tile
        ]
        out_specs = pl.BlockSpec((None, sz, td),
                                 lambda b, s, d: (b, 0, s * n_d + d))
        semantics = ("parallel", "parallel", "parallel")
    else:
        grid = (bz,)                                    # one batch row per step
        in_specs = [
            pl.BlockSpec((None, 1, sz), lambda b: (b, 0, 0)),
            pl.BlockSpec((1, half), lambda b: (0, 0)),
        ]
        out_specs = pl.BlockSpec((None, sz, embedding_dim), lambda b: (b, 0, 0))
        semantics = ("parallel",)

    return pl.pallas_call(
        kernel,
        out_shape=jax.ShapeDtypeStruct((bz, sz, embedding_dim), out_dtype),
        grid_spec=pltpu.PrefetchScalarGridSpec(
            num_scalar_prefetch=0,
            grid=grid,
            in_specs=in_specs,
            out_specs=out_specs,
        ),
        compiler_params=pltpu.CompilerParams(
            dimension_semantics=semantics,
            vmem_limit_bytes=vmem_limit,
        ),
    )(ids3, freq)


# ----------------------------------------------------------------------------
# Pure-JAX reference (sanity check against the kernel)
# ----------------------------------------------------------------------------
def _reference(input_ids, weights, padding_idx: int):
    mask = (input_ids != padding_idx).astype(jnp.int32)
    positions = jnp.cumsum(mask, axis=1) * mask + padding_idx
    return weights[positions]


if __name__ == "__main__":
    def _check(ids, num_embeddings, embedding_dim, padding_idx):
        out = sinusoidal_positional_embedding(ids, embedding_dim, padding_idx)
        out = jax.block_until_ready(out)
        weights = reset_parameters(num_embeddings, embedding_dim, padding_idx)
        ref = _reference(ids, weights, padding_idx)
        assert out.shape == ref.shape, (out.shape, ref.shape)
        max_err = float(jnp.max(jnp.abs(out - ref)))
        assert jnp.allclose(out, ref, atol=1e-5, rtol=1e-5), max_err

    key = jax.random.PRNGKey(0)
    k0, k1 = jax.random.split(key)

    # Small shapes consistent with the module's forward (unaligned path, S=8, D=32).
    batch, seq = 2, 8
    num_embeddings, embedding_dim, padding_idx = 64, 32, 1
    ids = jax.random.randint(k0, (batch, seq), 2, 20, dtype=jnp.int32)
    ids = ids.at[0, 5:].set(padding_idx)      # trailing padding
    ids = ids.at[1, 0].set(padding_idx)       # leading padding
    _check(ids, num_embeddings, embedding_dim, padding_idx)

    # Lane-aligned shapes: exercises the pltpu.roll scan + split sin/cos grid path.
    batch2, seq2, num_emb2, dim2, pad2 = 1, 128, 160, 256, 0
    ids2 = jax.random.randint(k1, (batch2, seq2), 1, 30, dtype=jnp.int32)
    ids2 = ids2.at[0, 40:].set(pad2)          # long padded tail
    _check(ids2, num_emb2, dim2, pad2)

    print("KERNEL_OK")
</pallas_src>

<mosaic_0001>
module attributes {stable_mosaic.version = 11 : i64} {
  func.func @_pos_emb_kernel(%arg0: i32, %arg1: memref<1x1x8xi32, #tpu.memory_space<vmem>>, %arg2: memref<1x16xf32, #tpu.memory_space<vmem>>, %arg3: memref<1x8x32xf32, #tpu.memory_space<vmem>>) attributes {dimension_semantics = [#tpu.dimension_semantics<parallel>], iteration_bounds = array<i64: 2>, scalar_prefetch = 0 : i64, scratch_operands = 0 : i64, tpu.core_type = #tpu.core_type<tc>, window_params = [{transform_indices = @transform_0, window_bounds = array<i64: 1, 1, 8>}, {pipeline_mode = #tpu.pipeline_mode<synchronous>, transform_indices = @transform_1, window_bounds = array<i64: 1, 16>}, {transform_indices = @transform_2, window_bounds = array<i64: 1, 8, 32>}]} {
    %c0 = arith.constant 0 : index
    %c0_0 = arith.constant 0 : index
    %c0_1 = arith.constant 0 : index
    %0 = vector.load %arg1[%c0, %c0_0, %c0_1] : memref<1x1x8xi32, #tpu.memory_space<vmem>>, vector<1x1x8xi32>
    %1 = vector.shape_cast %0 : vector<1x1x8xi32> to vector<1x8xi32>
    %c1_i32 = arith.constant 1 : i32
    %2 = vector.broadcast %c1_i32 : i32 to vector<1x8xi32>
    %3 = arith.cmpi ne, %1, %2 : vector<1x8xi32>
    %4 = arith.extui %3 : vector<1x8xi1> to vector<1x8xi32>
    %5 = arith.sitofp %4 : vector<1x8xi32> to vector<1x8xf32>
    %cst = arith.constant 0.000000e+00 : f32
    %6 = vector.broadcast %cst : f32 to vector<1x1xf32>
    %7 = vector.extract_strided_slice %5 {offsets = [0, 0], sizes = [1, 7], strides = [1, 1]} : vector<1x8xf32> to vector<1x7xf32>
    %8 = tpu.concatenate %6, %7 in 1 : vector<1x1xf32>, vector<1x7xf32> -> vector<1x8xf32>
    %9 = arith.addf %5, %8 : vector<1x8xf32>
    %cst_2 = arith.constant 0.000000e+00 : f32
    %10 = vector.broadcast %cst_2 : f32 to vector<1x2xf32>
    %11 = vector.extract_strided_slice %9 {offsets = [0, 0], sizes = [1, 6], strides = [1, 1]} : vector<1x8xf32> to vector<1x6xf32>
    %12 = tpu.concatenate %10, %11 in 1 : vector<1x2xf32>, vector<1x6xf32> -> vector<1x8xf32>
    %13 = arith.addf %9, %12 : vector<1x8xf32>
    %cst_3 = arith.constant 0.000000e+00 : f32
    %14 = vector.broadcast %cst_3 : f32 to vector<1x4xf32>
    %15 = vector.extract_strided_slice %13 {offsets = [0, 0], sizes = [1, 4], strides = [1, 1]} : vector<1x8xf32> to vector<1x4xf32>
    %16 = tpu.concatenate %14, %15 in 1 : vector<1x4xf32>, vector<1x4xf32> -> vector<1x8xf32>
    %17 = arith.addf %13, %16 : vector<1x8xf32>
    %18 = arith.mulf %17, %5 : vector<1x8xf32>
    %cst_4 = arith.constant 1.000000e+00 : f32
    %19 = vector.broadcast %cst_4 : f32 to vector<1x8xf32>
    %20 = arith.addf %18, %19 : vector<1x8xf32>
    %21 = tpu.transpose %20, [1, 0] : vector<1x8xf32> -> vector<8x1xf32>
    %cst_5 = arith.constant 1.000000e+00 : f32
    %22 = vector.broadcast %cst_5 : f32 to vector<8x1xf32>
    %23 = arith.cmpf ogt, %21, %22 : vector<8x1xf32>
    %24 = arith.extui %23 : vector<8x1xi1> to vector<8x1xi32>
    %25 = arith.sitofp %24 : vector<8x1xi32> to vector<8x1xf32>
    %c0_6 = arith.constant 0 : index
    %c0_7 = arith.constant 0 : index
    %26 = vector.load %arg2[%c0_6, %c0_7] : memref<1x16xf32, #tpu.memory_space<vmem>>, vector<1x16xf32>
    %27 = vector.broadcast %21 : vector<8x1xf32> to vector<8x16xf32>
    %28 = vector.broadcast %26 : vector<1x16xf32> to vector<8x16xf32>
    %29 = arith.mulf %27, %28 : vector<8x16xf32>
    %30 = math.sin %29 : vector<8x16xf32>
    %31 = vector.broadcast %25 : vector<8x1xf32> to vector<8x16xf32>
    %32 = arith.mulf %30, %31 : vector<8x16xf32>
    %33 = math.cos %29 : vector<8x16xf32>
    %34 = vector.broadcast %25 : vector<8x1xf32> to vector<8x16xf32>
    %35 = arith.mulf %33, %34 : vector<8x16xf32>
    %36 = tpu.concatenate %32, %35 in 1 : vector<8x16xf32>, vector<8x16xf32> -> vector<8x32xf32>
    %c0_8 = arith.constant 0 : index
    %c0_9 = arith.constant 0 : index
    %c0_10 = arith.constant 0 : index
    %37 = vector.load %arg3[%c0_8, %c0_9, %c0_10] : memref<1x8x32xf32, #tpu.memory_space<vmem>>, vector<1x8x32xf32>
    %38 = vector.shape_cast %37 : vector<1x8x32xf32> to vector<8x32xf32>
    %39 = vector.shape_cast %36 : vector<8x32xf32> to vector<1x8x32xf32>
    tpu.vector_store %arg3[%c0_8, %c0_9, %c0_10], %39 {strides = array<i32>} : memref<1x8x32xf32, #tpu.memory_space<vmem>>, vector<1x8x32xf32>,
    return
  }
  func.func @transform_0(%arg0: i32) -> (i32, i32, i32) {
    %c0_i32 = arith.constant 0 : i32
    %c0_i32_0 = arith.constant 0 : i32
    %c0_i32_1 = arith.constant 0 : i32
    return %arg0, %c0_i32, %c0_i32_0 : i32, i32, i32
  }
  func.func @transform_1(%arg0: i32) -> (i32, i32) {
    %c0_i32 = arith.constant 0 : i32
    %c0_i32_0 = arith.constant 0 : i32
    %c0_i32_1 = arith.constant 0 : i32
    return %c0_i32, %c0_i32_0 : i32, i32
  }
  func.func @transform_2(%arg0: i32) -> (i32, i32, i32) {
    %c0_i32 = arith.constant 0 : i32
    %c0_i32_0 = arith.constant 0 : i32
    %c0_i32_1 = arith.constant 0 : i32
    return %arg0, %c0_i32, %c0_i32_0 : i32, i32, i32
  }
}

</mosaic_0001>

<bundles_post_ra>
// kernel: tpu_custom_call.1
= control target key start
LH: loop header
LB: loop body
LE: loop exit
PB: predicated region body
PF: predicated region fallthrough
CT: control target
= control target key end

     0   :  { %7 = vsyncpa [#allocation3], 0  ;;  %s947_s0 = inlined_call_operand.hbm [shape: s32[2,1,8], index: 0, kind: input, shape index: {}]   ;;  %s948_s1 = inlined_call_operand.vmem [shape: f32[1,16], index: 1, kind: input, shape index: {}]   ;;  %s949_s2 = inlined_call_operand.hbm [shape: f32[2,8,32], index: 2, kind: output, shape index: {}]  }
   0x1   :  { %9 = vsyncpa [#allocation3 + $0x1], 0 }
   0x2   :  { %10 = vsyncpa [#allocation4], 0 }
   0x3   :  { %12 = vsyncpa [#allocation4 + $0x1], 0  ;;  %s761_s9 = smov 0   ;;  %s763_s10 = smov 0  }
   0x4   :  { %s765_s11 = smov 0   ;;  %s767_s12 = smov 0  }
   0x5 LB: > { %s782_s13 = sadd.s32 4294967295, %s730_s12   ;;  %s546_s14 = sadd.s32 4294967294, %s730_s12   ;;  %s730_s12 = sphi %s767_s12, %s964_s12   ;;  %s726_s11 = sphi %s765_s11, %s963_s11   ;;  %s722_s10 = sphi %s763_s10, %s962_s10   ;;  %s718_s9 = sphi %s761_s9, %s961_s9  }
   0x6   : > { %s786_s15 = sadd.s32 1, %s730_s12   ;;  %s25_s16 = sadd.s32 1, %s726_s11 }
   0x7   : > { %s22_s17 = ssub.s32 %s730_s12, %s786_s15  ;;  %p32_p0 = scmp.ne.s32.totalorder %s726_s11, %s722_s10 }
   0x8   : > { %p23_p1 = scmp.eq.s32.totalorder %s22_s17, 0  ;;  %p33_p2 = scmp.eq.s32.totalorder %s730_s12, 0 }
   0x9   : > { %p38_p3 = scmp.ne.s32.totalorder %s722_s10, %s718_s9  ;;  %p39_p4 = scmp.eq.s32.totalorder %s782_s13, 0 }
   0xa   : > { %s798_s18 = scalar_select %p23_p1, %s726_s11, %s25_s16  }
   0xb   : > { %p800_p5 = por %p33_p2, %p32_p0  ;;  %p804_p6 = por %p39_p4, %p38_p3 }
   0xc   : > { %p83_p7 = scmp.eq.s32.totalorder %s782_s13, 1  ;;  %p89_p8 = scmp.eq.s32.totalorder %s546_s14, 1 }
   0xd   : > { %p583_p10 = scmp.lt.s32.totalorder %s730_s12, 2  ;;  %s112_s23 = sand.u32 1, %s726_s11  }
   0xe   : > { %p811_p11 = por %p83_p7, %p32_p0  ;;  %p815_p12 = por %p89_p8, %p38_p3 }
   0xf   : > { %s549_s24 = sshll.u32 %s730_s12, 4  ;;  %s115_s28 = scalar_lea.vmem [#allocation2], %s112_s23 }
  0x10   : > { %s953_s21 = scalar_select %p811_p11, 1, 0 }
  0x11   : > { %s954_s22 = scalar_select %p815_p12, 1, 0 }
  0x12   : > { %s824_s27 = scalar_lea.hbm %s947_s0, %s549_s24  ;;  %s122_s29 = sshll.u32 %s115_s28, 4  ;;  %s826_s29 = int_to_ptr.vmem [resolvable:$true] %s122_s29 }
  0x13   : > { %p830_p13 = pnand %p583_p10, %p800_p5  ;;  %s113_s3 = scalar_lea.sflag [#allocation3], %s112_s23 }
  0x14   : > { %s634_s4 = scalar_lea.hbm %s824_s27, 16  ;;  %s639_s7 = scalar_lea.hbm %s947_s0, 32 }
  0x15   : > { %p635_p2 = scmp.ne.s32.totalorder %s824_s27, %s634_s4  ;;  %p636_p3 = pneg %p830_p13 }
  0x16   : > { %p640_p5 = scmp.lt.u32.totalorder %s824_s27, %s947_s0  ;;  %p641_p8 = scmp.lt.u32.totalorder %s639_s7, %s634_s4 }
  0x17   : > { %p637_p4 = pnand %p636_p3, %p635_p2  ;;  %p643_p9 = scmp.lt.u32.totalorder %s634_s4, %s824_s27 }
  0x18   : > { %p642_p10 = por %p641_p8, %p640_p5 }
  0x19   : > { %p638_p7 = pneg %p637_p4 }
  0x1a   : > { %p644_p0 = por %p643_p9, %p642_p10 }
  0x1c   : > { %p645_p1 = pnand %p644_p0, %p638_p7 }
  0x1e   : > { %648 = shalt.err (!%p645_p1)
}
  0x1f   : > { %s649_s16 = scalar_lea.vmem %s826_s29, 16  ;;  %s732_s17 = smov [#allocation2]  }
  0x20   : > { %p650_p2 = scmp.ne.s32.totalorder %s826_s29, %s649_s16  ;;  %s654_s19 = sshll.u32 %s732_s17, 4  ;;  %s655_s19 = int_to_ptr.vmem [resolvable:$false] %s654_s19 }
  0x21   : > { %s656_s23 = scalar_lea.vmem %s655_s19, 32  ;;  %p657_p11 = scmp.lt.s32.totalorder %s826_s29, %s655_s19 }
  0x22   : > { %p652_p4 = pnand %p650_p2, %p636_p3  ;;  %p658_p5 = scmp.lt.s32.totalorder %s656_s23, %s649_s16 }
  0x24   : > { %p653_p12 = pneg %p652_p4  ;;  %p659_p8 = por %p658_p5, %p657_p11 }
  0x26   : > { %p660_p9 = pnand %p659_p8, %p653_p12 }
  0x28   : > { %663 = shalt.err (!%p660_p9)
}
  0x29   : > { %578 = dma.hbm_to_vmem [thread:$0]  (!%p830_p13), %s824_s27, 16, %s826_s29, %s113_s3  }
  0x2a   : > { %p956_p0 = scmp.lt.s32.totalorder %s730_s12, 3  ;;  %p957_p1 = scmp.ge.s32.totalorder %s730_s12, 1 }
  0x2c   : > { %p128_p3 = pnand %p957_p1, %p956_p0 }
  0x2d   : > { %s866_s24 = sand.u32 (!%p128_p3), 1, %s722_s10  }
  0x2e   : > { %131 = sbr.rel (%p128_p3) target bundleno = 894 (0x37e), region = 28  ;;  %s134_s25 = scalar_lea.sflag (!%p128_p3), [#allocation3], %s866_s24 }
  0x2f   : > { %s136_s26 = scalar_lea.vmem (!%p128_p3), [#allocation2], %s866_s24 }
  0x35   : > { %709 = dma.done.wait (%p804_p6), %s134_s25, 16  }
  0x36   : > { %711 = vsyncadd (%p804_p6), %s134_s25, 4294967280  ;;  %v161_v0 = vlaneseq  ;;  %v156_v3 = vld [vmem:[%s136_s26] sm:$0x1]  ;;  %v733_v4 = vmov 0.0   ;;  %s734_s27 = smov 1   ;;  %vm168_vm1 = vcmask 7168  }
  0x37   : > { %vm157_vm0 = vcmp.ne.s32.totalorder %v156_v3, 1  ;;  %s735_s28 = smov 2   ;;  %vm179_vm2 = vcmask 15360   ;;  %v736_v13 = vmov 0   ;;  %s737_s20 = smov 4   ;;  %vm190_vm3 = vcmask 31744  }
  0x38   : > { %v162_v1 = vshrl.u32 %v161_v0, 7  ;;  %v552_v5 = vsel %vm157_vm0, 1.0, %v733_v4  ;;  %629 = vset.pattern.permute.xlu0 %v736_v13  ;;  %v554_v23 = vld [vmem:[%s948_s1] ss:$0 sm:$0xff]  ;;  %v738_v36 = vmov 683565275  }
  0x39   : > { %v739_v38 = vmov 2475754826   ;;  %v740_v41 = vmov 2131351028   ;;  %v741_v44 = vmov 2102212464  }
  0x3a   : > { %v163_v2 = vsub.s32 0, %v162_v1  ;;  %v742_v47 = vmov 920167782   ;;  %v743_v50 = vmov 1326507024   ;;  %s744_s3 = smov 16  }
  0x3b   : > { %s551_s4 = sshll.u32 %s866_s24, 3  ;;  %s564_s5 = sshll.u32 %s782_s13, 7 }
  0x3c   : > { %v164_v6 = vrot.slane %v552_v5, %v163_v2  ;;  %s155_s6 = scalar_lea.vmem [#allocation5], %s551_s4  ;;  %s903_s16 = scalar_lea.hbm %s949_s2, %s564_s5 }
  0x3d   : > { %s479_s7 = sshll.u32 %s155_s6, 4  ;;  %s466_s17 = scalar_lea.sflag [#allocation4], %s866_s24  ;;  %s905_s7 = int_to_ptr.vmem [resolvable:$true] %s479_s7 }
  0x3e   : > { %165 = vrot.lane.b32.xlu0 %v164_v6, %s734_s27  ;;  %s664_s13 = scalar_lea.vmem %s905_s7, 128  ;;  %p958_p11 = scmp.ne.s32.totalorder %s953_s21, 0 }
  0x3f   : > { %p665_p6 = scmp.ne.s32.totalorder %s905_s7, %s664_s13  ;;  %s745_s19 = smov [#allocation5]  }
  0x40   : > { %s668_s23 = sshll.u32 %s745_s19, 4  ;;  %s669_s23 = int_to_ptr.vmem [resolvable:$false] %s668_s23 }
  0x41   : > { %p666_p12 = pnand %p665_p6, %p958_p11  ;;  %s670_s25 = scalar_lea.vmem %s669_s23, 256 }
  0x42   : > { %p671_p7 = scmp.lt.s32.totalorder %s905_s7, %s669_s23  ;;  %p672_p10 = scmp.lt.s32.totalorder %s670_s25, %s664_s13 }
  0x43   : > { %p667_p13 = pneg %p666_p12 }
  0x44   : > { %p673_p2 = por %p672_p10, %p671_p7 }
  0x46   : > { %p674_p4 = pnand %p673_p2, %p667_p13 }
  0xb0   : > { %v166_v7 = vpop.permute.xlu0 %165 }
  0xb1   : > { %v169_v8 = vsel %vm168_vm1, 0.0, %v166_v7 }
  0xb2   : > { %v170_v9 = vadd.f32 %v552_v5, %v169_v8 }
  0xb4   : > { %v175_v10 = vrot.slane %v170_v9, %v163_v2 }
  0xb6   : > { %176 = vrot.lane.b32.xlu0 %v175_v10, %s735_s28 }
 0x128   : > { %v177_v11 = vpop.permute.xlu0 %176 }
 0x129   : > { %v180_v12 = vsel %vm179_vm2, 0.0, %v177_v11 }
 0x12a   : > { %v181_v14 = vadd.f32 %v180_v12, %v170_v9 }
 0x12c   : > { %v186_v15 = vrot.slane %v181_v14, %v163_v2 }
 0x12e   : > { %187 = vrot.lane.b32.xlu1 %v186_v15, %s737_s20 }
 0x1a0   : > { %v188_v16 = vpop.permute.xlu1 %187 }
 0x1a1   : > { %v191_v17 = vsel %vm190_vm3, 0.0, %v188_v16 }
 0x1a2   : > { %v192_v18 = vadd.f32 %v191_v17, %v181_v14 }
 0x1a4   : > { %v193_v19 = vmul.f32 %v552_v5, %v192_v18 }
 0x1a6   : > { %v194_v20 = vadd.f32 1.0, %v193_v19 }
 0x1a8   : > { %195 = vxpose.xlu1.b32.start.end [1/1] (short) (narrow) %v194_v20, 8 }
 0x228   : > { %v211_v21 = vpop.trf.xlu1 }
 0x229   : > { %vm227_vm4 = vcmp.gt.f32.partialorder %v211_v21, 1.0  ;;  %233 = vperm.xlu0 %629, %v211_v21  }
 0x22a   : > { %v553_v22 = vsel %vm227_vm4, 1.0, %v733_v4 }
 0x22d   : > { %349 = vperm.xlu0 %629, %v553_v22  }
 0x2a8   : > { %v234_v24 = vpop.permute.xlu0 %233 }
 0x2a9   : > { %v877_v25 = vmul.f32 %v554_v23, %v234_v24 }
 0x2ab   : > { %v246_v26 = vand.u32 2139095040, %v877_v25  ;;  %v243_v30 = vand.u32 2147483647, %v877_v25  ;;  %vm245_vm12 = vcmp.lt.s32.totalorder %v877_v25, 0  ;;  %vm335_vm4 = vweird.f32 %v877_v25 }
 0x2ad   : > { %v247_v27 = vshrl.u32 %v246_v26, 23  ;;  %v250_v33 = vand.u32 8388607, %v243_v30  ;;  %vm244_vm13 = vcmp.le.f32.partialorder %v243_v30, 0.7853982 }
 0x2af   : > { %v555_v28 = vadd.s32 4294967169, %v247_v27  ;;  %v251_v52 = vor.u32 8388608, %v250_v33 }
 0x2b1   : > { %v253_v29 = vadd.s32 1, %v555_v28  ;;  %v291_v2 = vshll.u32 %v251_v52, 8 }
 0x2b3   : > { %vm254_vm5 = vcmp.gt.s32.totalorder %v253_v29, 0 }
 0x2b4   : > { %v255_v31 = vsel %vm254_vm5, %v253_v29, 0  ;;  %vm461_vm5 = vcmask 130048  }
 0x2b5   : > { %v257_v32 = vand.u32 31, %v255_v31  ;;  %v256_v35 = vshrl.u32 %v255_v31, 5 }
 0x2b7   : > { %v258_v34 = vsub.s32 32, %v257_v32  ;;  %v260_v37 = vshll.u32 %v738_v36, %v257_v32  ;;  %v263_v39 = vshll.u32 %v739_v38, %v257_v32  ;;  %v266_v43 = vshll.u32 %v740_v41, %v257_v32 }
 0x2b8   : > { %v269_v46 = vshll.u32 %v741_v44, %v257_v32  ;;  %v272_v49 = vshll.u32 %v742_v47, %v257_v32  ;;  %vm275_vm6 = vcmp.lt.s32.totalorder %v256_v35, 1  ;;  %vm278_vm7 = vcmp.lt.s32.totalorder %v256_v35, 4 }
 0x2b9   : > { %v261_v40 = vshrl.u32 %v739_v38, %v258_v34  ;;  %v264_v42 = vshrl.u32 %v740_v41, %v258_v34  ;;  %v267_v45 = vshrl.u32 %v741_v44, %v258_v34  ;;  %v270_v48 = vshrl.u32 %v742_v47, %v258_v34 }
 0x2ba   : > { %v273_v51 = vshrl.u32 %v743_v50, %v258_v34  ;;  %v259_v61 = vshrl.u32 %v738_v36, %v258_v34  ;;  %vm277_vm8 = vcmp.lt.s32.totalorder %v256_v35, 3  ;;  %vm276_vm9 = vcmp.lt.s32.totalorder %v256_v35, 2 }
 0x2bb   : > { %v262_v53 = vor.u32 %v261_v40, %v260_v37  ;;  %v265_v54 = vor.u32 %v264_v42, %v263_v39  ;;  %v268_v55 = vor.u32 %v267_v45, %v266_v43  ;;  %v271_v56 = vor.u32 %v270_v48, %v269_v46 }
 0x2bc   : > { %v274_v57 = vor.u32 %v273_v51, %v272_v49 }
 0x2bd   : > { %v280_v58 = vsel %vm278_vm7, %v268_v55, 2102212464  ;;  %v283_v59 = vsel %vm275_vm6, %v262_v53, %v265_v54  ;;  %v287_v60 = vsel %vm275_vm6, %v265_v54, %v268_v55  ;;  %v284_v62 = vsel %vm278_vm7, %v271_v56, 920167782 }
 0x2be   : > { %v288_v63 = vsel %vm278_vm7, %v274_v57, 1326507024  ;;  %v285_v0 = vsel %vm277_vm8, %v268_v55, %v284_v62  ;;  %v279_v3 = vsel %vm275_vm6, %v259_v61, %v262_v53  ;;  %v281_v4 = vsel %vm277_vm8, %v265_v54, %v280_v58 }
 0x2bf   : > { %v289_v1 = vsel %vm277_vm8, %v271_v56, %v288_v63  ;;  %v286_v5 = vsel %vm276_vm9, %v283_v59, %v285_v0  ;;  %v282_v11 = vsel %vm276_vm9, %v279_v3, %v281_v4  ;;  %v350_v59 = vpop.permute.xlu0 %349  ;;  %vm463_vm6 = vcmask 261120  }
 0x2c0   : > { %v290_v6 = vsel %vm276_vm9, %v287_v60, %v289_v1  ;;  %v886_v9 = vmul.u32.u64.low %v291_v2, %v286_v5  ;;  %v887_v10 = vmul.u32.u64.high %v291_v2, %v286_v5, %v886_v9  ;;  %v298_v13 = vmul.u32 %v291_v2, %v282_v11 }
 0x2c1   : > { %v883_v7 = vmul.u32.u64.low %v291_v2, %v290_v6  ;;  %v884_v8 = vmul.u32.u64.high %v291_v2, %v290_v6, %v883_v7 }
 0x2c2   : > { %v301_v12 = vadd.s32 1, %v887_v10 }
 0x2c3   : > { %vm300_vm10 = vc.u32 %v884_v8, %v886_v9  ;;  %v299_v26 = vadd.s32 %v886_v9, %v884_v8 }
 0x2c4   : > { %v302_v14 = vsel %vm300_vm10, %v301_v12, %v887_v10 }
 0x2c5   : > { %v303_v15 = vadd.s32 %v302_v14, %v298_v13 }
 0x2c7   : > { %v304_v16 = vadd.s32 536870912, %v303_v15 }
 0x2c9   : > { %v305_v17 = vshrl.u32 %v304_v16, 30 }
 0x2cb   : > { %v306_v18 = vshll.u32 %v305_v17, 30  ;;  %v329_v39 = vsub.s32 4, %v305_v17 }
 0x2cd   : > { %v307_v19 = vsub.s32 %v303_v15, %v306_v18  ;;  %v330_v42 = vsel %vm245_vm12, %v329_v39, %v305_v17 }
 0x2ce   : > { %v332_v44 = vsel %vm244_vm13, 0, %v330_v42 }
 0x2cf   : > { %v309_v20 = vsub.s32 0, %v307_v19  ;;  %v336_v45 = vadd.s32 3, %v332_v44  ;;  %v446_v47 = vand.u32 3, %v332_v44 }
 0x2d1   : > { %v556_v21 = vmin.u32 %v309_v20, %v307_v19  ;;  %v337_v46 = vand.u32 3, %v336_v45  ;;  %vm451_vm15 = vcmp.eq.s32.totalorder %v446_v47, 2  ;;  %vm448_vm1 = vcmp.eq.s32.totalorder %v446_v47, 0 }
 0x2d2   : > { %vm447_vm3 = vcmp.lt.s32.totalorder %v446_v47, 2 }
 0x2d3   : > { %v311_v22 = vclz %v556_v21  ;;  %vm342_vm14 = vcmp.eq.s32.totalorder %v337_v46, 2  ;;  %vm339_vm0 = vcmp.eq.s32.totalorder %v337_v46, 0  ;;  %vm338_vm2 = vcmp.lt.s32.totalorder %v337_v46, 2 }
 0x2d5   : > { %v557_v23 = vadd.s32 4294967294, %v311_v22 }
 0x2d7   : > { %vm558_vm11 = vcmp.lt.s32.totalorder %v557_v23, 0 }
 0x2d8   : > { %v314_v24 = vsel %vm558_vm11, 0, %v557_v23 }
 0x2d9   : > { %v315_v27 = vsub.s32 32, %v314_v24  ;;  %v319_v28 = vsub.s32 4294967266, %v314_v24  ;;  %v316_v29 = vshll.u32 %v307_v19, %v314_v24 }
 0x2db   : > { %v317_v31 = vshrl.u32 %v299_v26, %v315_v27  ;;  %v320_v32 = vadd.s32 127, %v319_v28 }
 0x2dd   : > { %v318_v33 = vor.u32 %v317_v31, %v316_v29  ;;  %v321_v34 = vshll.u32 %v320_v32, 23 }
 0x2df   : > { %v322_v35 = vor.u32 4788187, %v321_v34  ;;  %v325_v37 = vcvt.s32.f32 %v318_v33 }
 0x2e1   : > { %v323_v36 = vand.u32 2147483647, %v322_v35 }
 0x2e3   : > { %v326_v38 = vmul.f32 %v325_v37, %v323_v36 }
 0x2e5   : > { %v327_v40 = vxor.u32 2147483648, %v326_v38 }
 0x2e7   : > { %v328_v41 = vsel %vm245_vm12, %v327_v40, %v326_v38 }
 0x2e8   : > { %v331_v43 = vsel %vm244_vm13, %v877_v25, %v328_v41 }
 0x2e9   : > { %630 = vcosq.f32 %v331_v43 }
 0x2ea   : > { %632 = vsinq.f32 %v331_v43 }
 0x2f3   : > { %v631_v48 = vpop.eup %630 }
 0x2f4   : > { %v633_v49 = vpop.eup %632  ;;  %v343_v50 = vxor.u32 2147483648, %v631_v48 }
 0x2f5   : > { %v340_v51 = vxor.u32 2147483648, %v633_v49 }
 0x2f6   : > { %v344_v52 = vsel %vm342_vm14, %v343_v50, %v633_v49  ;;  %v453_v30 = vsel %vm451_vm15, %v343_v50, %v633_v49 }
 0x2f7   : > { %v341_v53 = vsel %vm339_vm0, %v631_v48, %v340_v51  ;;  %v450_v54 = vsel %vm448_vm1, %v631_v48, %v340_v51 }
 0x2f8   : > { %v345_v55 = vsel %vm338_vm2, %v341_v53, %v344_v52  ;;  %v454_v56 = vsel %vm447_vm3, %v450_v54, %v453_v30 }
 0x2f9   : > { %v346_v57 = vsel %vm335_vm4, nan, %v345_v55  ;;  %v455_v58 = vsel %vm335_vm4, nan, %v454_v56 }
 0x2fa   : > { %v456_v60 = vmul.f32 %v455_v58, %v350_v59  ;;  %v352_v61 = vmul.f32 %v350_v59, %v346_v57 }
 0x2fc   : > { %458 = vrot.lane.b32.xlu0 %v456_v60, %s744_s3 }
 0x36e   : > { %v459_v62 = vpop.permute.xlu0 %458 }
 0x36f   : > { %v462_v25 = vsel %vm461_vm5, %v352_v61, %v459_v62 }
 0x370   : > { %464 = vst.msk [vmem:[%s155_s6] sm:$0xff] %vm463_vm6, %v462_v25 }
 0x371   : > { %677 = shalt.err (!%p674_p4)
}
 0x372   : > { %s678_s24 = scalar_lea.hbm %s903_s16, 128  ;;  %s682_s28 = scalar_lea.hbm %s949_s2, 256 }
 0x373   : > { %p679_p5 = scmp.ne.s32.totalorder %s903_s16, %s678_s24  ;;  %p683_p0 = scmp.lt.u32.totalorder %s903_s16, %s949_s2 }
 0x374   : > { %p684_p1 = scmp.lt.u32.totalorder %s682_s28, %s678_s24  ;;  %p686_p6 = scmp.lt.u32.totalorder %s678_s24, %s903_s16 }
 0x375   : > { %p680_p8 = pnand %p679_p5, %p958_p11 }
 0x376   : > { %p685_p3 = por %p684_p1, %p683_p0 }
 0x377   : > { %p681_p9 = pneg %p680_p8 }
 0x378   : > { %p687_p12 = por %p686_p6, %p685_p3 }
 0x37a   : > { %p688_p13 = pnand %p687_p12, %p681_p9 }
 0x37c   : > { %691 = shalt.err (!%p688_p13)
}
 0x37d   : > { %573 = dma.vmem_to_hbm [thread:$0]  (%p958_p11), %s905_s7, 128, %s903_s16, %s466_s17  }
 0x37e PF: > { %s491_s30 = sand.u32 1, %s718_s9   ;;  %p959_p7 = scmp.ne.s32.totalorder %s954_s22, 0 }
 0x37f   : > { %p960_p10 = scmp.ge.s32.totalorder %s730_s12, 2  ;;  %s492_s3 = scalar_lea.sflag [#allocation4], %s491_s30 }
 0x381   : > { %p580_p2 = pnand %p960_p10, %p959_p7 }
 0x383   : > { %713 = dma.done.wait (!%p580_p2), %s492_s3, 128  }
 0x384   : > { %715 = vsyncadd (!%p580_p2), %s492_s3, 4294967168  ;;  %p15_p4 = scmp.ge.s32.totalorder %s786_s15, 4   ;;  %s961_s9 = smov %s722_s10 }
 0x385   : > { %s962_s10 = smov %s726_s11  ;;  %s963_s11 = smov %s798_s18 }
 0x386   : > { %s964_s12 = smov %s786_s15  ;;  %17 = sbr.rel (!%p15_p4) target bundleno = 5 (0x5), region = 73 }
 0x38d   :  { %497 = vsyncpa [#allocation3], 1 }
 0x38e   :  { %499 = vsyncpa [#allocation3 + $0x1], 1 }
 0x38f   :  { %500 = vsyncpa [#allocation4], 1 }
 0x390   :  { %502 = vsyncpa [#allocation4 + $0x1], 1 }

</bundles_post_ra>
